<compile_context>
chip_gen: v6e
topology: v6e:2x2x1
jax: 0.10.0
libtpu: 0.0.40
codegen_flags: <defaults>
</compile_context>

<pallas_src>
import functools

import jax
import jax.numpy as jnp
from jax.experimental import pallas as pl
from jax.experimental.pallas import tpu as pltpu


def _round_up(x, m):
    return (x + m - 1) // m * m


def _cdiv(a, b):
    return (a + b - 1) // b


def _dense_block_kernel(x_ref, *refs, num_convs, in_channels, out_channels,
                        use_bf16_matmul):
    """Fused DenseBlock forward for one batch tile, feature-major layout.

    x_ref:              (in_channels, bn)            -- x^T tile
    refs[:num_convs]:   w_i (out_channels, in_channels + i*out_channels)
                        (PyTorch nn.Linear layout, whole array in VMEM)
    refs[num_convs]:    bias pack (out_channels, num_convs)
    refs[num_convs+1]:  out_ref (in_channels + num_convs*out_channels, bn)
    """
    w_refs = refs[:num_convs]
    bias_ref = refs[num_convs]
    out_ref = refs[num_convs + 1]

    # Seed the feature slab with x^T. All sublane slices below start/stop at
    # multiples of 8, so they are tile-aligned for f32.
    out_ref[0:in_channels, :] = x_ref[...]

    for i in range(num_convs):                           # static unroll
        k_i = in_channels + i * out_channels
        feat = out_ref[0:k_i, :]                         # (K_i, bn) aligned slab
        w = w_refs[i][...]                               # (out_channels, K_i)
        if use_bf16_matmul:
            # TODO(synk): enable only if the surrounding model tolerates the
            # looser-than-1e-5 matmul precision (v6e/v7x bf16 MXU fast path).
            w = w.astype(jnp.bfloat16)
            feat = feat.astype(jnp.bfloat16)
        y = jnp.dot(w, feat, preferred_element_type=jnp.float32)   # (out, bn)
        y = y + bias_ref[:, i:i + 1]                     # broadcast along lanes
        y = jnp.where(y > 0, y, jnp.float32(0.01) * y)   # LeakyReLU(0.01)
        out_ref[k_i:k_i + out_channels, :] = y.astype(out_ref.dtype)


def _choose_block_n(n, cap=2048):
    # Lane (batch) tile: full batch if small; otherwise a multiple of 128
    # capped at `cap`, sized so batch > 128 always yields >= 2 grid steps
    # (lets dimension_semantics=("parallel",) use both v7x TensorCores).
    if n <= 128:
        return n
    return min(cap, _round_up(_cdiv(n, 2), 128))


def dense_block_forward(x, weights, biases, *, num_convs, in_channels,
                        out_channels, use_bf16_matmul=False):
    """x: (N, in_channels); weights[i]: (out_channels, in_channels+i*out_channels)
    (PyTorch nn.Linear layout); biases[i]: (out_channels,)."""
    n = x.shape[0]
    total_out = in_channels + num_convs * out_channels

    # Layout plumbing only (no pad / unpad): put batch on the lane axis.
    x_t = x.T                                          # (in_channels, N)
    bias_pack = jnp.stack(biases, axis=1)              # (out_channels, num_convs)

    block_n = _choose_block_n(n)
    grid = (_cdiv(n, block_n),)

    kernel = functools.partial(
        _dense_block_kernel, num_convs=num_convs, in_channels=in_channels,
        out_channels=out_channels, use_bf16_matmul=use_bf16_matmul)

    # x is blocked over the batch (lane) axis; weights / bias pack are tiny
    # grid-invariant params resident whole in VMEM.
    in_specs = [pl.BlockSpec((in_channels, block_n), lambda i: (0, i))]
    in_specs += [pl.BlockSpec(memory_space=pltpu.MemorySpace.VMEM)
                 for _ in range(num_convs)]                       # weights
    in_specs += [pl.BlockSpec(memory_space=pltpu.MemorySpace.VMEM)]  # biases

    out_t = pl.pallas_call(
        kernel,
        out_shape=jax.ShapeDtypeStruct((total_out, n), x.dtype),
        grid=grid,
        in_specs=in_specs,
        out_specs=pl.BlockSpec((total_out, block_n), lambda i: (0, i)),
        compiler_params=pltpu.CompilerParams(
            dimension_semantics=("parallel",)),
    )(x_t, *weights, bias_pack)

    return out_t.T                                     # back to (N, total_out)


def dense_block_reference(x, weights, biases):
    """Pure-JAX reference mirroring the PyTorch forward (weights in (out,in))."""
    for w, b in zip(weights, biases):
        y = x @ w.T + b
        y = jnp.where(y > 0, y, 0.01 * y)
        x = jnp.concatenate([x, y], axis=1)
    return x


if __name__ == "__main__":
    # DenseBlock(num_convs=3, in_channels=16, out_channels=8) on X of (256, 16).
    # batch=256 -> two 128-wide lane tiles, exercising the multi-step grid.
    num_convs, in_channels, out_channels = 3, 16, 8
    batch = 256

    key = jax.random.PRNGKey(0)
    kx, *kws = jax.random.split(key, 1 + 2 * num_convs)

    x = jax.random.normal(kx, (batch, in_channels), dtype=jnp.float32)

    weights, biases = [], []
    for i in range(num_convs):
        in_c = in_channels + i * out_channels
        kw, kb = kws[2 * i], kws[2 * i + 1]
        bound = 1.0 / float(in_c) ** 0.5
        # PyTorch nn.Linear layout: (out_features, in_features).
        w = jax.random.uniform(kw, (out_channels, in_c), jnp.float32,
                               minval=-bound, maxval=bound)
        b = jax.random.uniform(kb, (out_channels,), jnp.float32,
                               minval=-bound, maxval=bound)
        weights.append(w)
        biases.append(b)

    fwd = jax.jit(functools.partial(dense_block_forward,
                                    num_convs=num_convs,
                                    in_channels=in_channels,
                                    out_channels=out_channels))
    out = jax.block_until_ready(fwd(x, weights, biases))

    ref = dense_block_reference(x, weights, biases)
    assert out.shape == (batch, in_channels + num_convs * out_channels)
    assert jnp.allclose(out, ref, atol=1e-5, rtol=1e-5), "mismatch vs reference"

    print("KERNEL_OK")
</pallas_src>

<mosaic_0001>
module attributes {stable_mosaic.version = 11 : i64} {
  func.func @_dense_block_kernel(%arg0: i32, %arg1: memref<16x128xf32, #tpu.memory_space<vmem>>, %arg2: memref<8x16xf32, #tpu.memory_space<vmem>>, %arg3: memref<8x24xf32, #tpu.memory_space<vmem>>, %arg4: memref<8x32xf32, #tpu.memory_space<vmem>>, %arg5: memref<8x3xf32, #tpu.memory_space<vmem>>, %arg6: memref<40x128xf32, #tpu.memory_space<vmem>>) attributes {dimension_semantics = [#tpu.dimension_semantics<parallel>], iteration_bounds = array<i64: 2>, scalar_prefetch = 0 : i64, scratch_operands = 0 : i64, tpu.core_type = #tpu.core_type<tc>, window_params = [{transform_indices = @transform_0, window_bounds = array<i64: 16, 128>}, {pipeline_mode = #tpu.pipeline_mode<synchronous>, transform_indices = @transform_1, window_bounds = array<i64: 8, 16>}, {pipeline_mode = #tpu.pipeline_mode<synchronous>, transform_indices = @transform_2, window_bounds = array<i64: 8, 24>}, {pipeline_mode = #tpu.pipeline_mode<synchronous>, transform_indices = @transform_3, window_bounds = array<i64: 8, 32>}, {pipeline_mode = #tpu.pipeline_mode<synchronous>, transform_indices = @transform_4, window_bounds = array<i64: 8, 3>}, {transform_indices = @transform_5, window_bounds = array<i64: 40, 128>}]} {
    %c0 = arith.constant 0 : index
    %c0_0 = arith.constant 0 : index
    %0 = vector.load %arg1[%c0, %c0_0] : memref<16x128xf32, #tpu.memory_space<vmem>>, vector<16x128xf32>
    %c0_1 = arith.constant 0 : index
    %c0_2 = arith.constant 0 : index
    %1 = vector.load %arg6[%c0_1, %c0_2] : memref<40x128xf32, #tpu.memory_space<vmem>>, vector<16x128xf32>
    tpu.vector_store %arg6[%c0_1, %c0_2], %0 {strides = array<i32>} : memref<40x128xf32, #tpu.memory_space<vmem>>, vector<16x128xf32>,
    %c0_3 = arith.constant 0 : index
    %c0_4 = arith.constant 0 : index
    %2 = vector.load %arg6[%c0_3, %c0_4] : memref<40x128xf32, #tpu.memory_space<vmem>>, vector<16x128xf32>
    %c0_5 = arith.constant 0 : index
    %c0_6 = arith.constant 0 : index
    %3 = vector.load %arg2[%c0_5, %c0_6] : memref<8x16xf32, #tpu.memory_space<vmem>>, vector<8x16xf32>
    %cst = arith.constant dense<0.000000e+00> : vector<8x128xf32>
    %4 = tpu.matmul %3, %2, %cst {dimension_numbers = #tpu.dot_dimension_numbers<[1], [0], [0], [1], [0, 0, 1, 1], [], []>} : vector<8x16xf32>, vector<16x128xf32>, vector<8x128xf32> -> vector<8x128xf32>
    %c0_7 = arith.constant 0 : index
    %c0_8 = arith.constant 0 : index
    %5 = vector.load %arg5[%c0_7, %c0_8] : memref<8x3xf32, #tpu.memory_space<vmem>>, vector<8x1xf32>
    %6 = vector.broadcast %5 : vector<8x1xf32> to vector<8x128xf32>
    %7 = arith.addf %4, %6 : vector<8x128xf32>
    %cst_9 = arith.constant 0.000000e+00 : f32
    %8 = vector.broadcast %cst_9 : f32 to vector<8x128xf32>
    %9 = arith.cmpf ogt, %7, %8 : vector<8x128xf32>
    %cst_10 = arith.constant 0.00999999977 : f32
    %10 = vector.broadcast %cst_10 : f32 to vector<8x128xf32>
    %11 = arith.mulf %10, %7 : vector<8x128xf32>
    %12 = arith.select %9, %7, %11 : vector<8x128xi1>, vector<8x128xf32>
    %c16 = arith.constant 16 : index
    %c0_11 = arith.constant 0 : index
    %13 = vector.load %arg6[%c16, %c0_11] : memref<40x128xf32, #tpu.memory_space<vmem>>, vector<8x128xf32>
    tpu.vector_store %arg6[%c16, %c0_11], %12 {strides = array<i32>} : memref<40x128xf32, #tpu.memory_space<vmem>>, vector<8x128xf32>,
    %c0_12 = arith.constant 0 : index
    %c0_13 = arith.constant 0 : index
    %14 = vector.load %arg6[%c0_12, %c0_13] : memref<40x128xf32, #tpu.memory_space<vmem>>, vector<24x128xf32>
    %c0_14 = arith.constant 0 : index
    %c0_15 = arith.constant 0 : index
    %15 = vector.load %arg3[%c0_14, %c0_15] : memref<8x24xf32, #tpu.memory_space<vmem>>, vector<8x24xf32>
    %cst_16 = arith.constant dense<0.000000e+00> : vector<8x128xf32>
    %16 = tpu.matmul %15, %14, %cst_16 {dimension_numbers = #tpu.dot_dimension_numbers<[1], [0], [0], [1], [0, 0, 1, 1], [], []>} : vector<8x24xf32>, vector<24x128xf32>, vector<8x128xf32> -> vector<8x128xf32>
    %c0_17 = arith.constant 0 : index
    %c1 = arith.constant 1 : index
    %17 = vector.load %arg5[%c0_17, %c1] : memref<8x3xf32, #tpu.memory_space<vmem>>, vector<8x1xf32>
    %18 = vector.broadcast %17 : vector<8x1xf32> to vector<8x128xf32>
    %19 = arith.addf %16, %18 : vector<8x128xf32>
    %cst_18 = arith.constant 0.000000e+00 : f32
    %20 = vector.broadcast %cst_18 : f32 to vector<8x128xf32>
    %21 = arith.cmpf ogt, %19, %20 : vector<8x128xf32>
    %cst_19 = arith.constant 0.00999999977 : f32
    %22 = vector.broadcast %cst_19 : f32 to vector<8x128xf32>
    %23 = arith.mulf %22, %19 : vector<8x128xf32>
    %24 = arith.select %21, %19, %23 : vector<8x128xi1>, vector<8x128xf32>
    %c24 = arith.constant 24 : index
    %c0_20 = arith.constant 0 : index
    %25 = vector.load %arg6[%c24, %c0_20] : memref<40x128xf32, #tpu.memory_space<vmem>>, vector<8x128xf32>
    tpu.vector_store %arg6[%c24, %c0_20], %24 {strides = array<i32>} : memref<40x128xf32, #tpu.memory_space<vmem>>, vector<8x128xf32>,
    %c0_21 = arith.constant 0 : index
    %c0_22 = arith.constant 0 : index
    %26 = vector.load %arg6[%c0_21, %c0_22] : memref<40x128xf32, #tpu.memory_space<vmem>>, vector<32x128xf32>
    %c0_23 = arith.constant 0 : index
    %c0_24 = arith.constant 0 : index
    %27 = vector.load %arg4[%c0_23, %c0_24] : memref<8x32xf32, #tpu.memory_space<vmem>>, vector<8x32xf32>
    %cst_25 = arith.constant dense<0.000000e+00> : vector<8x128xf32>
    %28 = tpu.matmul %27, %26, %cst_25 {dimension_numbers = #tpu.dot_dimension_numbers<[1], [0], [0], [1], [0, 0, 1, 1], [], []>} : vector<8x32xf32>, vector<32x128xf32>, vector<8x128xf32> -> vector<8x128xf32>
    %c0_26 = arith.constant 0 : index
    %c2 = arith.constant 2 : index
    %29 = vector.load %arg5[%c0_26, %c2] : memref<8x3xf32, #tpu.memory_space<vmem>>, vector<8x1xf32>
    %30 = vector.broadcast %29 : vector<8x1xf32> to vector<8x128xf32>
    %31 = arith.addf %28, %30 : vector<8x128xf32>
    %cst_27 = arith.constant 0.000000e+00 : f32
    %32 = vector.broadcast %cst_27 : f32 to vector<8x128xf32>
    %33 = arith.cmpf ogt, %31, %32 : vector<8x128xf32>
    %cst_28 = arith.constant 0.00999999977 : f32
    %34 = vector.broadcast %cst_28 : f32 to vector<8x128xf32>
    %35 = arith.mulf %34, %31 : vector<8x128xf32>
    %36 = arith.select %33, %31, %35 : vector<8x128xi1>, vector<8x128xf32>
    %c32 = arith.constant 32 : index
    %c0_29 = arith.constant 0 : index
    %37 = vector.load %arg6[%c32, %c0_29] : memref<40x128xf32, #tpu.memory_space<vmem>>, vector<8x128xf32>
    tpu.vector_store %arg6[%c32, %c0_29], %36 {strides = array<i32>} : memref<40x128xf32, #tpu.memory_space<vmem>>, vector<8x128xf32>,
    return
  }
  func.func @transform_0(%arg0: i32) -> (i32, i32) {
    %c0_i32 = arith.constant 0 : i32
    %c0_i32_0 = arith.constant 0 : i32
    return %c0_i32, %arg0 : i32, i32
  }
  func.func @transform_1(%arg0: i32) -> (i32, i32) {
    %c0_i32 = arith.constant 0 : i32
    %c0_i32_0 = arith.constant 0 : i32
    %c0_i32_1 = arith.constant 0 : i32
    return %c0_i32, %c0_i32_0 : i32, i32
  }
  func.func @transform_2(%arg0: i32) -> (i32, i32) {
    %c0_i32 = arith.constant 0 : i32
    %c0_i32_0 = arith.constant 0 : i32
    %c0_i32_1 = arith.constant 0 : i32
    return %c0_i32, %c0_i32_0 : i32, i32
  }
  func.func @transform_3(%arg0: i32) -> (i32, i32) {
    %c0_i32 = arith.constant 0 : i32
    %c0_i32_0 = arith.constant 0 : i32
    %c0_i32_1 = arith.constant 0 : i32
    return %c0_i32, %c0_i32_0 : i32, i32
  }
  func.func @transform_4(%arg0: i32) -> (i32, i32) {
    %c0_i32 = arith.constant 0 : i32
    %c0_i32_0 = arith.constant 0 : i32
    %c0_i32_1 = arith.constant 0 : i32
    return %c0_i32, %c0_i32_0 : i32, i32
  }
  func.func @transform_5(%arg0: i32) -> (i32, i32) {
    %c0_i32 = arith.constant 0 : i32
    %c0_i32_0 = arith.constant 0 : i32
    return %c0_i32, %arg0 : i32, i32
  }
}

</mosaic_0001>

<bundles_post_ra>
// kernel: dense_block_forward.1
= control target key start
LH: loop header
LB: loop body
LE: loop exit
PB: predicated region body
PF: predicated region fallthrough
CT: control target
= control target key end

     0   :  { %10 = vsyncpa [#allocation4], 0  ;;  %s962_s0 = inlined_call_operand.vmem [shape: f32[16,256], index: 0, kind: input, shape index: {}]   ;;  %s963_s1 = inlined_call_operand.vmem [shape: f32[8,16], index: 1, kind: input, shape index: {}]   ;;  %s964_s2 = inlined_call_operand.vmem [shape: f32[8,24], index: 2, kind: input, shape index: {}]   ;;  %s965_s3 = inlined_call_operand.vmem [shape: f32[8,32], index: 3, kind: input, shape index: {}]   ;;  %s966_s4 = inlined_call_operand.vmem [shape: f32[8,3], index: 4, kind: input, shape index: {}]   ;;  %s967_s5 = inlined_call_operand.hbm [shape: f32[40,256], index: 5, kind: output, shape index: {}]  }
   0x1   :  { %12 = vsyncpa [#allocation4 + $0x1], 0  ;;  %s816_s18 = smov 0   ;;  %s818_s19 = smov 0  }
   0x2   :  { %s820_s20 = smov 0   ;;  %s822_s21 = smov 0  }
   0x3 LB: > { %s610_s22 = sadd.s32 4294967295, %s775_s21   ;;  %s611_s23 = sadd.s32 4294967294, %s775_s21   ;;  %s775_s21 = sphi %s822_s21, %s973_s21   ;;  %s771_s20 = sphi %s820_s20, %s972_s20   ;;  %s767_s19 = sphi %s818_s19, %s971_s19   ;;  %s763_s18 = sphi %s816_s18, %s970_s18  }
   0x4   : > { %s839_s24 = sadd.s32 1, %s775_s21   ;;  %s25_s25 = sadd.s32 1, %s771_s20 }
   0x5   : > { %s22_s26 = ssub.s32 %s775_s21, %s839_s24  ;;  %p32_p0 = scmp.ne.s32.totalorder %s771_s20, %s767_s19 }
   0x6   : > { %p23_p1 = scmp.eq.s32.totalorder %s22_s26, 0  ;;  %p33_p2 = scmp.eq.s32.totalorder %s775_s21, 0 }
   0x7   : > { %p146_p3 = scmp.eq.s32.totalorder %s610_s22, 1  ;;  %p151_p4 = scmp.ne.s32.totalorder %s767_s19, %s763_s18 }
   0x8   : > { %s852_s27 = scalar_select %p23_p1, %s771_s20, %s25_s25  }
   0x9   : > { %p34_p5 = por %p33_p2, %p32_p0  ;;  %p854_p6 = por %p146_p3, %p32_p0 }
   0xa   : > { %p152_p7 = scmp.eq.s32.totalorder %s611_s23, 1  ;;  %p613_p9 = scmp.ge.s32.totalorder %s775_s21, 2 }
   0xc   : > { %p858_p8 = por %p152_p7, %p151_p4  ;;  %180 = sbr.rel (%p613_p9) target bundleno = 22 (0x16), region = 32 }
  0x11   : > { %183 = sbr.rel (!%p34_p5) target bundleno = 22 (0x16), region = 36  ;;  %s185_s30 = sand.u32 (%p34_p5), 1, %s771_s20  }
  0x12   : > { %s615_s6 = sshll.u32 (%p34_p5), %s775_s21, 3  ;;  %s614_s7 = sshll.u32 (%p34_p5), %s185_s30, 4 }
  0x13   : > { %s189_s10 = scalar_lea.vmem (%p34_p5), %s962_s0, %s615_s6  ;;  %s187_s11 = scalar_lea.vmem (%p34_p5), [#allocation2], %s614_s7 }
  0x14   : > { %v220_v0 = vld [vmem:[%s189_s10] sm:$0xff] (%p34_p5)  ;;  %v222_v1 = vld [vmem:[%s189_s10 + $0x10] sm:$0xff] (%p34_p5) }
  0x15   : > { %221 = vst [vmem:[%s187_s11] sm:$0xff] (%p34_p5), %v220_v0  ;;  %223 = vst [vmem:[%s187_s11 + $0x8] sm:$0xff] (%p34_p5), %v222_v1 }
  0x16 PF: > { %p616_p10 = scmp.ge.s32.totalorder %s775_s21, 1  ;;  %p228_p11 = scmp.lt.s32.totalorder %s775_s21, 3 }
  0x18   : > { %p229_p12 = pnand %p616_p10, %p228_p11 }
  0x19   : > { %s873_s12 = sand.u32 (!%p229_p12), 1, %s767_s19   ;;  %s621_s9 = sshll.u32 (!%p229_p12), %s610_s22, 7 }
  0x1a   : > { %232 = sbr.rel (%p229_p12) target bundleno = 659 (0x293), region = 74  ;;  %s617_s13 = sshll.u32 (!%p229_p12), %s873_s12, 4 }
  0x1b   : > { %s663_s14 = smul.u32 (!%p229_p12), 40, %s873_s12  ;;  %s237_s17 = scalar_lea.vmem (!%p229_p12), [#allocation2], %s617_s13 }
  0x1c   : > { %s531_s15 = scalar_lea.sflag (!%p229_p12), [#allocation4], %s873_s12  ;;  %s782_s16 = smov (!%p229_p12), [#allocation3]  }
  0x1d   : > { %s886_s23 = scalar_lea.vmem (!%p229_p12), [#allocation3], %s663_s14  ;;  %s916_s14 = scalar_lea.hbm (!%p229_p12), %s967_s5, %s621_s9 }
  0x1e   : > { %s543_s10 = sshll.u32 (!%p229_p12), %s886_s23, 4  ;;  %s918_s10 = int_to_ptr.vmem [resolvable:$true] %s543_s10 }
  0x1f   : > { %v777_v2 = vmov 0.0   ;;  %vm778_vm0 = vmmov 0   ;;  %v269_v3 = vld [vmem:[%s966_s4] sm:$0xff]  ;;  %v779_v4 = vmov 0   ;;  %v263_v5 = vld [vmem:[%s237_s17 + $0x8] sm:$0xff]  ;;  %vm275_vm1 = vcmask 130048  }
  0x20   : > { %636 = vmatprep.subr.mxu1 %v777_v2  ;;  %640 = vmatprep.mubr.msk.f32.mxu1 %vm778_vm0, %v777_v2  ;;  %v262_v6 = vld [vmem:[%s237_s17] sm:$0xff]  ;;  %265 = vst [vmem:[%s886_s23 + $0x8] sm:$0xff] %v263_v5  ;;  %v780_v8 = vmov 1   ;;  %vm363_vm3 = vcmask 195584   ;;  %v781_v16 = vmov 2   ;;  %vm452_vm5 = vcmask 261120  }
  0x21   : > { %711 = vset.pattern.permute.xlu0 %v779_v4  ;;  %652 = vmatprep.subr.mxu0 %v777_v2  ;;  %264 = vst [vmem:[%s886_s23] sm:$0xff] %v262_v6  ;;  %v268_v7 = vld [vmem:[%s963_s1] sm:$0xff]  ;;  %s715_s22 = scalar_lea.vmem %s918_s10, 640  ;;  %s719_s17 = sshll.u32 %s782_s16, 4  ;;  %s720_s17 = int_to_ptr.vmem [resolvable:$false] %s719_s17 }
  0x22   : > { %272 = vperm.xlu0 %711, %v269_v3   ;;  %660 = vmatprep.mubr.msk.f32.mxu0 %vm778_vm0, %v777_v2  ;;  %v356_v15 = vld [vmem:[%s964_s2] sm:$0xff]  ;;  %p716_p13 = scmp.ne.s32.totalorder %s918_s10, %s715_s22  ;;  %s721_s25 = scalar_lea.vmem %s720_s17, 1280 }
  0x23   : > { %637 = vmatpush3.msra.mxu1 %v263_v5  ;;  %713 = vset.pattern.permute.xlu1 %v781_v16  ;;  %v445_v23 = vld [vmem:[%s965_s3] sm:$0xff]  ;;  %p722_p2 = scmp.lt.s32.totalorder %s918_s10, %s720_s17  ;;  %p723_p3 = scmp.lt.s32.totalorder %s721_s25, %s715_s22 }
  0x24   : > { %638 = vmatprep.subr.mxu1 %v777_v2  ;;  %449 = vperm.xlu1 %713, %v269_v3   ;;  %p717_p0 = pnand %p716_p13, %p854_p6 }
  0x25   : > { %639 = vmatpush3.msra.mxu1 %v262_v6  ;;  %p724_p4 = por %p723_p3, %p722_p2 }
  0x26   : > { %641 = vmatmul.mubr.msk.f32.vlgmr.msra.gmra.mxu1 %vm275_vm1, %v268_v7  ;;  %643 = vmatprep.subr.mxu1 %v777_v2  ;;  %p718_p1 = pneg %p717_p0 }
  0x27   : > { %649 = vmatprep.mubr.msk.f32.mxu1 %vm778_vm0, %v777_v2  ;;  %712 = vset.pattern.permute.xlu0 %v780_v8 }
  0x28   : > { %360 = vperm.xlu0 %712, %v269_v3   ;;  %p725_p5 = pnand %p724_p4, %p718_p1 }
  0x2c   : > { %714 = vset.pattern.permute.xlu0 %v781_v16 }
  0x9d   : > { %v273_v9 = vpop.permute.xlu0 %272 }
  0x9f   : > { %v450_v24 = vpop.permute.xlu1 %449 }
  0xa3   : > { %v361_v17 = vpop.permute.xlu0 %360 }
  0xe6   : > { %v345_v10 = vpop.f32.mrf.mxu1 }
  0xe7   : > { %v346_v11 = vadd.f32 %v345_v10, %v273_v9 }
  0xe8   : > { %v642_v12 = vpop.f32.mrf.mxu1 }
  0xe9   : > { %vm349_vm2 = vcmp.gt.f32.partialorder %v346_v11, 0.0  ;;  %v350_v13 = vmul.f32 0.01, %v346_v11 }
  0xeb   : > { %v351_v14 = vsel %vm349_vm2, %v346_v11, %v350_v13 }
  0xec   : > { %352 = vst [vmem:[%s886_s23 + $0x10] sm:$0xff] %v351_v14  ;;  %644 = vmatpush3.msra.mxu1 %v351_v14 }
  0xed   : > { %645 = vmatprep.subr.mxu1 %v777_v2 }
  0xee   : > { %646 = vmatpush3.msra.mxu1 %v263_v5 }
  0xef   : > { %647 = vmatprep.subr.mxu1 %v777_v2 }
  0xf0   : > { %648 = vmatpush3.msra.mxu1 %v262_v6 }
  0xf1   : > { %650 = vmatmul.mubr.msk.f32.vlgmr.msra.gmra.mxu1 %vm363_vm3, %v356_v15 }
 0x1b1   : > { %v433_v18 = vpop.f32.mrf.mxu1 }
 0x1b2   : > { %v434_v19 = vadd.f32 %v433_v18, %v361_v17 }
 0x1b3   : > { %v651_v20 = vpop.f32.mrf.mxu1 }
 0x1b4   : > { %vm437_vm4 = vcmp.gt.f32.partialorder %v434_v19, 0.0  ;;  %v438_v21 = vmul.f32 0.01, %v434_v19 }
 0x1b6   : > { %v439_v22 = vsel %vm437_vm4, %v434_v19, %v438_v21 }
 0x1b7   : > { %440 = vst [vmem:[%s886_s23 + $0x18] sm:$0xff] %v439_v22  ;;  %653 = vmatpush3.msra.mxu0 %v439_v22 }
 0x1b8   : > { %654 = vmatprep.subr.mxu0 %v777_v2 }
 0x1b9   : > { %655 = vmatpush3.msra.mxu0 %v351_v14 }
 0x1ba   : > { %656 = vmatprep.subr.mxu0 %v777_v2 }
 0x1bb   : > { %657 = vmatpush3.msra.mxu0 %v263_v5 }
 0x1bc   : > { %658 = vmatprep.subr.mxu0 %v777_v2 }
 0x1bd   : > { %659 = vmatpush3.msra.mxu0 %v262_v6 }
 0x1be   : > { %661 = vmatmul.mubr.msk.f32.vlgmr.msra.gmra.mxu0 %vm452_vm5, %v445_v23 }
 0x27e   : > { %v522_v25 = vpop.f32.mrf.mxu0 }
 0x27f   : > { %v523_v26 = vadd.f32 %v522_v25, %v450_v24 }
 0x280   : > { %v662_v27 = vpop.f32.mrf.mxu0 }
 0x281   : > { %vm526_vm6 = vcmp.gt.f32.partialorder %v523_v26, 0.0  ;;  %v527_v28 = vmul.f32 0.01, %v523_v26 }
 0x283   : > { %v528_v29 = vsel %vm526_vm6, %v523_v26, %v527_v28 }
 0x284   : > { %529 = vst [vmem:[%s886_s23 + $0x20] sm:$0xff] %v528_v29 }
 0x285   : > { %728 = shalt.err (!%p725_p5)
}
 0x286   : > { %s729_s23 = scalar_lea.hbm %s916_s14, 640  ;;  %s733_s6 = scalar_lea.hbm %s967_s5, 1280 }
 0x287   : > { %p730_p7 = scmp.ne.s32.totalorder %s916_s14, %s729_s23  ;;  %p734_p12 = scmp.lt.s32.totalorder %s916_s14, %s967_s5 }
 0x288   : > { %p735_p13 = scmp.lt.s32.totalorder %s733_s6, %s729_s23 }
 0x289   : > { %p731_p10 = pnand %p730_p7, %p854_p6 }
 0x28a   : > { %p736_p0 = por %p735_p13, %p734_p12 }
 0x28b   : > { %p732_p11 = pneg %p731_p10 }
 0x28d   : > { %p737_p1 = pnand %p736_p0, %p732_p11 }
 0x28f   : > { %740 = shalt.err (!%p737_p1)
}
 0x290   : > { %s783_s9 = smov 128   ;;  %s784_s11 = smov 256  }
 0x291   : > { %s785_s13 = smov 8  }
 0x292   : > { %664 = dma.vmem_to_hbm [thread:$0]  (%p854_p6), %s918_s10, 640, %s916_s14, %s531_s15, %s783_s9, %s784_s11, %s785_s13  }
 0x293 PF: > { %s558_s22 = sand.u32 1, %s763_s18   ;;  %p667_p2 = pnand %p613_p9, %p858_p8 }
 0x294   : > { %s559_s16 = scalar_lea.sflag [#allocation4], %s558_s22 }
 0x295   : > { %p668_p3 = pneg %p667_p2 }
 0x297   : > { %758 = dma.done.wait (%p668_p3), %s559_s16, 640  }
 0x298   : > { %760 = vsyncadd (%p668_p3), %s559_s16, 4294966656  ;;  %p15_p4 = scmp.ge.s32.totalorder %s839_s24, 4   ;;  %s970_s18 = smov %s767_s19 }
 0x299   : > { %s971_s19 = smov %s771_s20  ;;  %s972_s20 = smov %s852_s27 }
 0x29a   : > { %s973_s21 = smov %s839_s24  ;;  %17 = sbr.rel (!%p15_p4) target bundleno = 3 (0x3), region = 118 }
 0x29f   :  { %564 = vsyncpa [#allocation4], 1 }
 0x2a0   :  { %566 = vsyncpa [#allocation4 + $0x1], 1 }

</bundles_post_ra>
